<compile_context>
chip_gen: v7x
topology: tpu7x:2x2x1
jax: 0.10.0
libtpu: 0.0.40
codegen_flags: <defaults>
</compile_context>

<pallas_src>
import math

import jax
import jax.numpy as jnp
from jax.experimental import pallas as pl
from jax.experimental.pallas import tpu as pltpu


def _interp_kernel(tgt_ref, w1_ref, g_ref, whl_ref, vp_ref, cp_ref, out_ref):
    """Fused forward for one batch block.

    tgt_ref : (TB, 1, C)  target coordinates
    w1_ref  : (C, H)      k_net layer-1 weight
    g_ref   : (M, H)      folded  b1 - mesh_coords @ w1
    whl_ref : (H, L)      folded  k_w2 @ wk @ (scale * (query @ wq + bq)).T
    vp_ref  : (M, NV)     folded  (mesh_values @ wv + bv) @ wo @ last_w
    cp_ref  : (1, NV)     folded  L * (bo @ last_w + last_b)
    out_ref : (TB, 1, NV)
    """
    f32 = jnp.float32
    tb = tgt_ref.shape[0]
    m = g_ref.shape[0]
    l = whl_ref.shape[1]

    tgt = tgt_ref[:, 0, :].astype(f32)                                  # (TB, C)

    # k_net layer-1, distributed over the rel-coords subtraction: only the tiny
    # batch-dependent (TB, C) @ (C, H) half runs per call, the mesh half lives
    # in the folded constant g.
    a = jnp.dot(tgt, w1_ref[...].astype(f32),
                preferred_element_type=f32)                              # (TB, H)
    h = jax.nn.gelu(a[:, None, :] + g_ref[...].astype(f32)[None, :, :],
                    approximate=True)                                    # (TB, M, H)

    # k_net layer-2 + key-proj + scaled query-proj folded into whl: one batched
    # MXU dot over all TB targets.  (M is a multiple of 8 in the demo, so the
    # (TB, M, H) <-> (TB*M, H) reshapes are sublane-tile aligned.)
    s = jnp.dot(h.reshape(tb * m, h.shape[-1]), whl_ref[...].astype(f32),
                preferred_element_type=f32)                              # (TB*M, L)

    # Softmax over the mesh axis per (target, latent query).  The k-side biases
    # dropped during host folding are constant over the mesh axis, so the
    # softmax result is identical to the unfolded reference.
    s3 = s.reshape(tb, m, l)
    s3 = s3 - jnp.max(s3, axis=1, keepdims=True)
    e = jnp.exp(s3)
    denom = jnp.sum(e, axis=1, keepdims=True)                            # (TB, 1, L)
    p = e * pl.reciprocal(denom, approx=True)                            # (TB, M, L)

    # Because the reference sums the last layer over the latent axis, the whole
    # post-softmax chain collapses to (sum_L p) @ vp + cp.
    w = jnp.sum(p, axis=2)                                               # (TB, M)
    out = jnp.dot(w, vp_ref[...].astype(f32),
                  preferred_element_type=f32) + cp_ref[...].astype(f32)  # (TB, NV)

    # Single full-block store per grid step.
    out_ref[:, 0, :] = out.astype(out_ref.dtype)


def _fold_params(params):
    """Fold every batch-invariant weight chain of the module (host-side, once).

    In a real deployment this runs once at module-init time, not per call.
    """
    n_embd = params["wq"].shape[0]
    nlat = params["query"].shape[0]
    scale = 1.0 / math.sqrt(n_embd)                    # single attention head
    q_s = (params["query"] @ params["wq"] + params["bq"]) * scale        # (L, E)
    whl = params["k_w2"] @ params["wk"] @ q_s.T                          # (H, L)
    g = params["k_b1"] - params["mesh_coords"] @ params["k_w1"]          # (M, H)
    vp = ((params["mesh_values"] @ params["wv"] + params["bv"])
          @ params["wo"] @ params["last_w"])                             # (M, NV)
    cp = nlat * (params["bo"] @ params["last_w"] + params["last_b"])     # (1, NV)
    # NOTE: k_b2 and bk only shift attention scores by a per-latent-query
    # constant, which the softmax over the mesh axis cancels, so they vanish.
    return params["k_w1"], g, whl, vp, cp


def latent_mesh_interp_forward(params, tgt_coords, *, batch_block=None):
    """Fused Pallas forward of LatentMeshInterpolator."""
    bs, n_coords = tgt_coords.shape
    nval = params["last_w"].shape[1]

    # One grid step by default: single-TC v5e/v6e gain nothing from more steps
    # at these sizes.  On v7x pass batch_block=bs//2 to shard the (parallel)
    # batch axis across both TensorCores once per-step work is non-trivial.
    tb = bs if batch_block is None else batch_block
    assert bs % tb == 0, (bs, tb)
    grid = (bs // tb,)

    w1, g, whl, vp, cp = _fold_params(params)

    # Lift coords/output to 3-D so the last two block dims are full-extent
    # (satisfies the (8, 128) BlockSpec constraint for any batch block size).
    tgt3 = tgt_coords.reshape(bs, 1, n_coords)

    def const_spec(a):
        # TODO(synk): at production sizes add pipeline_mode=pl.Buffered(1) so
        # these never-changing blocks don't pay 2x VMEM for double buffering.
        return pl.BlockSpec(a.shape, lambda i: (0,) * a.ndim)

    weights = (w1, g, whl, vp, cp)
    in_specs = [pl.BlockSpec((tb, 1, n_coords), lambda i: (i, 0, 0))]
    in_specs += [const_spec(wgt) for wgt in weights]

    out = pl.pallas_call(
        _interp_kernel,
        out_shape=jax.ShapeDtypeStruct((bs, 1, nval), tgt_coords.dtype),
        grid_spec=pltpu.PrefetchScalarGridSpec(
            num_scalar_prefetch=0,
            grid=grid,
            in_specs=in_specs,
            out_specs=pl.BlockSpec((tb, 1, nval), lambda i: (i, 0, 0)),
        ),
        compiler_params=pltpu.CompilerParams(
            dimension_semantics=("parallel",),
        ),
    )(tgt3, *weights)

    return out.reshape(bs, nval)


def reference_forward(params, tgt_coords):
    """Pure-JAX reference (same math as the PyTorch module, unfolded)."""
    rel = tgt_coords[:, None, :] - params["mesh_coords"][None, :, :]      # (bs, M, C)
    h = jax.nn.gelu(rel @ params["k_w1"] + params["k_b1"], approximate=True)
    k_feat = h @ params["k_w2"] + params["k_b2"]                          # (bs, M, E)
    q_p = params["query"] @ params["wq"] + params["bq"]                   # (L, E)
    k_p = k_feat @ params["wk"] + params["bk"]                            # (bs, M, E)
    v_p = params["mesh_values"] @ params["wv"] + params["bv"]             # (M, E)
    scale = 1.0 / math.sqrt(q_p.shape[-1])
    scores = jnp.einsum("le,bme->blm", q_p * scale, k_p)                  # (bs, L, M)
    attn_w = jax.nn.softmax(scores, axis=-1)
    attn = jnp.einsum("blm,me->ble", attn_w, v_p)                         # (bs, L, E)
    attn = attn @ params["wo"] + params["bo"]
    last = attn @ params["last_w"] + params["last_b"]                     # (bs, L, NV)
    return jnp.sum(last, axis=1)                                          # (bs, NV)


if __name__ == "__main__":
    # Make the XLA reference, the host-side folding and the in-kernel matmuls
    # all use full-f32 precision.
    jax.config.update("jax_default_matmul_precision", "highest")

    bs, nmesh, n_coords = 4, 16, 3
    n_embd, hidden, nlat, nval = 32, 32, 8, 4

    key = jax.random.PRNGKey(0)
    ks = jax.random.split(key, 11)

    def linear(k, fan_in, fan_out):
        kw, kb = jax.random.split(k)
        w = jax.random.normal(kw, (fan_in, fan_out), jnp.float32) / math.sqrt(fan_in)
        b = 0.02 * jax.random.normal(kb, (1, fan_out), jnp.float32)
        return w, b

    params = {}
    params["mesh_coords"] = jax.random.uniform(ks[0], (nmesh, n_coords), jnp.float32)
    params["mesh_values"] = jax.random.uniform(ks[1], (nmesh, n_embd), jnp.float32)
    params["query"] = jax.random.normal(ks[2], (nlat, n_embd), jnp.float32) / math.sqrt(n_embd)
    params["k_w1"], params["k_b1"] = linear(ks[3], n_coords, hidden)
    params["k_w2"], params["k_b2"] = linear(ks[4], hidden, n_embd)
    params["wq"], params["bq"] = linear(ks[5], n_embd, n_embd)
    params["wk"], params["bk"] = linear(ks[6], n_embd, n_embd)
    params["wv"], params["bv"] = linear(ks[7], n_embd, n_embd)
    params["wo"], params["bo"] = linear(ks[8], n_embd, n_embd)
    params["last_w"], params["last_b"] = linear(ks[9], n_embd, nval)

    tgt_coords = jax.random.uniform(ks[10], (bs, n_coords), jnp.float32)

    out = latent_mesh_interp_forward(params, tgt_coords)
    out = jax.block_until_ready(out)

    ref = jax.block_until_ready(reference_forward(params, tgt_coords))

    assert out.shape == (bs, nval), out.shape
    max_err = float(jnp.max(jnp.abs(out - ref)))
    assert jnp.allclose(out, ref, rtol=5e-3, atol=5e-3), f"max abs err {max_err}"

    print("KERNEL_OK")
</pallas_src>

<mosaic_0001>
module attributes {stable_mosaic.version = 11 : i64} {
  func.func @_interp_kernel(%arg0: i32, %arg1: memref<4x1x3xf32, #tpu.memory_space<vmem>>, %arg2: memref<3x32xf32, #tpu.memory_space<vmem>>, %arg3: memref<16x32xf32, #tpu.memory_space<vmem>>, %arg4: memref<32x8xf32, #tpu.memory_space<vmem>>, %arg5: memref<16x4xf32, #tpu.memory_space<vmem>>, %arg6: memref<1x4xf32, #tpu.memory_space<vmem>>, %arg7: memref<4x1x4xf32, #tpu.memory_space<vmem>>) attributes {dimension_semantics = [#tpu.dimension_semantics<parallel>], iteration_bounds = array<i64: 1>, scalar_prefetch = 0 : i64, scratch_operands = 0 : i64, tpu.core_type = #tpu.core_type<tc>, window_params = [{transform_indices = @transform_0, window_bounds = array<i64: 4, 1, 3>}, {pipeline_mode = #tpu.pipeline_mode<synchronous>, transform_indices = @transform_1, window_bounds = array<i64: 3, 32>}, {pipeline_mode = #tpu.pipeline_mode<synchronous>, transform_indices = @transform_2, window_bounds = array<i64: 16, 32>}, {pipeline_mode = #tpu.pipeline_mode<synchronous>, transform_indices = @transform_3, window_bounds = array<i64: 32, 8>}, {pipeline_mode = #tpu.pipeline_mode<synchronous>, transform_indices = @transform_4, window_bounds = array<i64: 16, 4>}, {pipeline_mode = #tpu.pipeline_mode<synchronous>, transform_indices = @transform_5, window_bounds = array<i64: 1, 4>}, {transform_indices = @transform_6, window_bounds = array<i64: 4, 1, 4>}]} {
    %c0 = arith.constant 0 : index
    %c0_0 = arith.constant 0 : index
    %c0_1 = arith.constant 0 : index
    %0 = vector.load %arg1[%c0, %c0_0, %c0_1] : memref<4x1x3xf32, #tpu.memory_space<vmem>>, vector<4x1x3xf32>
    %1 = vector.shape_cast %0 : vector<4x1x3xf32> to vector<4x3xf32>
    %c0_2 = arith.constant 0 : index
    %c0_3 = arith.constant 0 : index
    %2 = vector.load %arg2[%c0_2, %c0_3] : memref<3x32xf32, #tpu.memory_space<vmem>>, vector<3x32xf32>
    %cst = arith.constant dense<0.000000e+00> : vector<4x32xf32>
    %3 = tpu.matmul %1, %2, %cst {dimension_numbers = #tpu.dot_dimension_numbers<[1], [0], [0], [1], [0, 0, 1, 1], [], []>, precision = #tpu.contract_precision<fp32>} : vector<4x3xf32>, vector<3x32xf32>, vector<4x32xf32> -> vector<4x32xf32>
    %4 = vector.shape_cast %3 : vector<4x32xf32> to vector<4x1x32xf32>
    %c0_4 = arith.constant 0 : index
    %c0_5 = arith.constant 0 : index
    %5 = vector.load %arg3[%c0_4, %c0_5] : memref<16x32xf32, #tpu.memory_space<vmem>>, vector<16x32xf32>
    %6 = vector.shape_cast %5 : vector<16x32xf32> to vector<1x16x32xf32>
    %7 = vector.broadcast %4 : vector<4x1x32xf32> to vector<4x16x32xf32>
    %8 = vector.broadcast %6 : vector<1x16x32xf32> to vector<4x16x32xf32>
    %9 = arith.addf %7, %8 : vector<4x16x32xf32>
    %10 = arith.mulf %9, %9 : vector<4x16x32xf32>
    %11 = arith.mulf %9, %10 : vector<4x16x32xf32>
    %cst_6 = arith.constant 4.471500e-02 : f32
    %12 = vector.broadcast %cst_6 : f32 to vector<4x16x32xf32>
    %13 = arith.mulf %12, %11 : vector<4x16x32xf32>
    %14 = arith.addf %9, %13 : vector<4x16x32xf32>
    %cst_7 = arith.constant 0.797884583 : f32
    %15 = vector.broadcast %cst_7 : f32 to vector<4x16x32xf32>
    %16 = arith.mulf %15, %14 : vector<4x16x32xf32>
    %17 = math.tanh %16 : vector<4x16x32xf32>
    %cst_8 = arith.constant 1.000000e+00 : f32
    %18 = vector.broadcast %cst_8 : f32 to vector<4x16x32xf32>
    %19 = arith.addf %18, %17 : vector<4x16x32xf32>
    %cst_9 = arith.constant 5.000000e-01 : f32
    %20 = vector.broadcast %cst_9 : f32 to vector<4x16x32xf32>
    %21 = arith.mulf %20, %19 : vector<4x16x32xf32>
    %22 = arith.mulf %9, %21 : vector<4x16x32xf32>
    %23 = vector.shape_cast %22 : vector<4x16x32xf32> to vector<64x32xf32>
    %c0_10 = arith.constant 0 : index
    %c0_11 = arith.constant 0 : index
    %24 = vector.load %arg4[%c0_10, %c0_11] : memref<32x8xf32, #tpu.memory_space<vmem>>, vector<32x8xf32>
    %cst_12 = arith.constant dense<0.000000e+00> : vector<64x8xf32>
    %25 = tpu.matmul %23, %24, %cst_12 {dimension_numbers = #tpu.dot_dimension_numbers<[1], [0], [0], [1], [0, 0, 1, 1], [], []>, precision = #tpu.contract_precision<fp32>} : vector<64x32xf32>, vector<32x8xf32>, vector<64x8xf32> -> vector<64x8xf32>
    %26 = vector.shape_cast %25 : vector<64x8xf32> to vector<4x16x8xf32>
    %cst_13 = arith.constant dense<0xFF800000> : vector<4x8xf32>
    %27 = vector.multi_reduction <maximumf>, %26, %cst_13 [1] : vector<4x16x8xf32> to vector<4x8xf32>
    %28 = vector.shape_cast %27 : vector<4x8xf32> to vector<4x1x8xf32>
    %29 = vector.broadcast %28 : vector<4x1x8xf32> to vector<4x16x8xf32>
    %30 = arith.subf %26, %29 : vector<4x16x8xf32>
    %31 = math.exp %30 : vector<4x16x8xf32>
    %cst_14 = arith.constant dense<0.000000e+00> : vector<4x8xf32>
    %32 = vector.multi_reduction <add>, %31, %cst_14 [1] : vector<4x16x8xf32> to vector<4x8xf32>
    %33 = vector.shape_cast %32 : vector<4x8xf32> to vector<4x1x8xf32>
    %34 = tpu.reciprocal %33 {approx = true} : vector<4x1x8xf32> -> vector<4x1x8xf32>
    %35 = vector.broadcast %34 : vector<4x1x8xf32> to vector<4x16x8xf32>
    %36 = arith.mulf %31, %35 : vector<4x16x8xf32>
    %cst_15 = arith.constant dense<0.000000e+00> : vector<4x16xf32>
    %37 = vector.multi_reduction <add>, %36, %cst_15 [2] : vector<4x16x8xf32> to vector<4x16xf32>
    %c0_16 = arith.constant 0 : index
    %c0_17 = arith.constant 0 : index
    %38 = vector.load %arg5[%c0_16, %c0_17] : memref<16x4xf32, #tpu.memory_space<vmem>>, vector<16x4xf32>
    %cst_18 = arith.constant dense<0.000000e+00> : vector<4x4xf32>
    %39 = tpu.matmul %37, %38, %cst_18 {dimension_numbers = #tpu.dot_dimension_numbers<[1], [0], [0], [1], [0, 0, 1, 1], [], []>, precision = #tpu.contract_precision<fp32>} : vector<4x16xf32>, vector<16x4xf32>, vector<4x4xf32> -> vector<4x4xf32>
    %c0_19 = arith.constant 0 : index
    %c0_20 = arith.constant 0 : index
    %40 = vector.load %arg6[%c0_19, %c0_20] : memref<1x4xf32, #tpu.memory_space<vmem>>, vector<1x4xf32>
    %41 = vector.broadcast %40 : vector<1x4xf32> to vector<4x4xf32>
    %42 = arith.addf %39, %41 : vector<4x4xf32>
    %c0_21 = arith.constant 0 : index
    %c0_22 = arith.constant 0 : index
    %c0_23 = arith.constant 0 : index
    %43 = vector.load %arg7[%c0_21, %c0_22, %c0_23] : memref<4x1x4xf32, #tpu.memory_space<vmem>>, vector<4x1x4xf32>
    %44 = vector.shape_cast %43 : vector<4x1x4xf32> to vector<4x4xf32>
    %45 = vector.shape_cast %42 : vector<4x4xf32> to vector<4x1x4xf32>
    tpu.vector_store %arg7[%c0_21, %c0_22, %c0_23], %45 {strides = array<i32>} : memref<4x1x4xf32, #tpu.memory_space<vmem>>, vector<4x1x4xf32>,
    return
  }
  func.func @transform_0(%arg0: i32) -> (i32, i32, i32) {
    %c0_i32 = arith.constant 0 : i32
    %c0_i32_0 = arith.constant 0 : i32
    %c0_i32_1 = arith.constant 0 : i32
    return %arg0, %c0_i32, %c0_i32_0 : i32, i32, i32
  }
  func.func @transform_1(%arg0: i32) -> (i32, i32) {
    %c0_i32 = arith.constant 0 : i32
    %c0_i32_0 = arith.constant 0 : i32
    %c0_i32_1 = arith.constant 0 : i32
    return %c0_i32, %c0_i32_0 : i32, i32
  }
  func.func @transform_2(%arg0: i32) -> (i32, i32) {
    %c0_i32 = arith.constant 0 : i32
    %c0_i32_0 = arith.constant 0 : i32
    %c0_i32_1 = arith.constant 0 : i32
    return %c0_i32, %c0_i32_0 : i32, i32
  }
  func.func @transform_3(%arg0: i32) -> (i32, i32) {
    %c0_i32 = arith.constant 0 : i32
    %c0_i32_0 = arith.constant 0 : i32
    %c0_i32_1 = arith.constant 0 : i32
    return %c0_i32, %c0_i32_0 : i32, i32
  }
  func.func @transform_4(%arg0: i32) -> (i32, i32) {
    %c0_i32 = arith.constant 0 : i32
    %c0_i32_0 = arith.constant 0 : i32
    %c0_i32_1 = arith.constant 0 : i32
    return %c0_i32, %c0_i32_0 : i32, i32
  }
  func.func @transform_5(%arg0: i32) -> (i32, i32) {
    %c0_i32 = arith.constant 0 : i32
    %c0_i32_0 = arith.constant 0 : i32
    %c0_i32_1 = arith.constant 0 : i32
    return %c0_i32, %c0_i32_0 : i32, i32
  }
  func.func @transform_6(%arg0: i32) -> (i32, i32, i32) {
    %c0_i32 = arith.constant 0 : i32
    %c0_i32_0 = arith.constant 0 : i32
    %c0_i32_1 = arith.constant 0 : i32
    return %arg0, %c0_i32, %c0_i32_0 : i32, i32, i32
  }
}

</mosaic_0001>

<bundles_post_ra>
// kernel: tpu_custom_call.1
= control target key start
LH: loop header
LB: loop body
LE: loop exit
PB: predicated region body
PF: predicated region fallthrough
CT: control target
= control target key end

     0   :  { %vm60_vm0 = vcmask 1042432   ;;  %v38_v1 = vlaneseq  ;;  %v2657_v2 = vmov 0.0   ;;  %vm2658_vm1 = vmmov 0   ;;  %s3015_s0 = inlined_call_operand.vmem [shape: f32[4,1,3], index: 0, kind: input, shape index: {}]   ;;  %s3016_s1 = inlined_call_operand.vmem [shape: f32[3,32], index: 1, kind: input, shape index: {}]   ;;  %s3017_s2 = inlined_call_operand.vmem [shape: f32[16,32], index: 2, kind: input, shape index: {}]   ;;  %s3018_s3 = inlined_call_operand.vmem [shape: f32[32,8], index: 3, kind: input, shape index: {}]   ;;  %s3019_s4 = inlined_call_operand.vmem [shape: f32[16,4], index: 4, kind: input, shape index: {}]   ;;  %s3020_s5 = inlined_call_operand.vmem [shape: f32[1,4], index: 5, kind: input, shape index: {}]   ;;  %s3021_s6 = inlined_call_operand.hbm [shape: f32[4,1,4], index: 6, kind: output, shape index: {}]  }
   0x1   :  { %v28_v0 = vld [vmem:[%s3016_s1] sm:$0x7]  ;;  %2263 = vmatprep.subr.mxu0 %v2657_v2  ;;  %2265 = vmatprep.mubr.msk.f32.mxu0 %vm2658_vm1, %v2657_v2  ;;  %v27_v8 = vld [vmem:[%s3015_s0 + $0x3] sm:$0x1] }
   0x2   :  { %v62_v3 = vsel %vm60_vm0, %v28_v0, 0  ;;  %v24_v4 = vld [vmem:[%s3015_s0] sm:$0x1]  ;;  %v25_v6 = vld [vmem:[%s3015_s0 + $0x1] sm:$0x1] }
   0x3   :  { %v65_v5 = vand.u32 4294901760, %v62_v3  ;;  %v26_v7 = vld [vmem:[%s3015_s0 + $0x2] sm:$0x1] }
   0x4   :  { %11 = vsyncpa [#allocation3], 0  ;;  %v2659_v9 = vmov 1966171168   ;;  %v2718_v11 = vshrl.u32 %v38_v1, 7  ;;  %v33_v12 = vcombine.low %v24_v4, %v25_v6  ;;  %v34_v13 = vcombine.low %v26_v7, %v27_v8  ;;  %v637_v30 = vld [vmem:[%s3018_s3] sm:$0xff] }
   0x5   :  { %2264 = vmatpush3.msra.mxu0 %v65_v5  ;;  %v36_v10 = vunpack.c.l.s4 %v2659_v9  ;;  %v142_v18 = vsub.f32 %v62_v3, %v65_v5  ;;  %vm57_vm2 = vcmask 23552   ;;  %v638_v31 = vld [vmem:[%s3018_s3 + $0x8] sm:$0xff]  ;;  %v667_v32 = vand.u32 4294901760, %v637_v30  ;;  %v639_v36 = vld [vmem:[%s3018_s3 + $0x10] sm:$0xff]  ;;  %v640_v37 = vld [vmem:[%s3018_s3 + $0x18] sm:$0xff]  ;;  %s2661_s20 = smov [#allocation2]  }
   0x6   :  { %2268 = vmatprep.subr.mxu0 %v2657_v2  ;;  %v670_v33 = vand.u32 4294901760, %v638_v31  ;;  %v673_v40 = vand.u32 4294901760, %v639_v36  ;;  %v676_v41 = vand.u32 4294901760, %v640_v37  ;;  %v539_v0 = vsub.s32 0, %v2718_v11  ;;  %v535_v6 = vld [vmem:[%s3017_s2] sm:$0xff]  ;;  %v536_v9 = vld [vmem:[%s3017_s2 + $0x8] sm:$0xff] }
   0x7   :  { %v37_v14 = vunpack.c.0.s8 %v36_v10  ;;  %v143_v22 = vand.u32 4294901760, %v142_v18  ;;  %v817_v34 = vsub.f32 %v637_v30, %v667_v32  ;;  %vm641_vm3 = vcmask 261120   ;;  %s2149_s21 = sshll.u32 %s2661_s20, 4  ;;  %s2150_s21 = int_to_ptr.vmem [resolvable:$true] %s2149_s21 }
   0x8   :  { %v824_v35 = vsub.f32 %v638_v31, %v670_v33  ;;  %v831_v44 = vsub.f32 %v639_v36, %v673_v40  ;;  %v838_v45 = vsub.f32 %v640_v37, %v676_v41  ;;  %v2756_v55 = vpack.c.bf16 %v670_v33, %v667_v32  ;;  %p2638_p1 = scmp.lt.s32.totalorder %s2150_s21, %s2150_s21 }
   0x9   :  { %v2722_v15 = vsub.s32 %v37_v14, %v2718_v11  ;;  %v144_v25 = vsub.f32 %v142_v18, %v143_v22  ;;  %v818_v38 = vand.u32 4294901760, %v817_v34  ;;  %v2768_v58 = vpack.c.bf16 %v676_v41, %v673_v40 }
   0xa   :  { %v825_v39 = vand.u32 4294901760, %v824_v35  ;;  %v832_v48 = vand.u32 4294901760, %v831_v44  ;;  %v839_v49 = vand.u32 4294901760, %v838_v45  ;;  %v2765_v57 = vpack.c.bf16 %v824_v35, %v817_v34 }
   0xb   :  { %v41_v16 = vrot.slane %v33_v12, %v2722_v15  ;;  %v48_v17 = vrot.slane %v34_v13, %v2722_v15  ;;  %v145_v28 = vand.u32 4294901760, %v144_v25  ;;  %v819_v42 = vsub.f32 %v817_v34, %v818_v38 }
   0xc   :  { %v826_v43 = vsub.f32 %v824_v35, %v825_v39  ;;  %v833_v51 = vsub.f32 %v831_v44, %v832_v48  ;;  %v840_v52 = vsub.f32 %v838_v45, %v839_v49  ;;  %v2770_v59 = vpack.c.bf16 %v838_v45, %v831_v44 }
   0xd   :  { %v49_v19 = vcombine.low %v41_v16, %v48_v17  ;;  %v820_v46 = vand.u32 4294901760, %v819_v42  ;;  %v2775_v60 = vpack.c.bf16 %v825_v39, %v818_v38  ;;  %v2777_v61 = vpack.c.bf16 %v839_v49, %v832_v48 }
   0xe   :  { %v827_v47 = vand.u32 4294901760, %v826_v43  ;;  %v834_v53 = vand.u32 4294901760, %v833_v51  ;;  %v841_v54 = vand.u32 4294901760, %v840_v52  ;;  %vm1452_vm4 = vcmask 64512  }
   0xf   :  { %v56_v20 = vrot.slane %v49_v19, %v2722_v15  ;;  %vm1613_vm5 = vcmask 130112   ;;  %vm1642_vm6 = vcmask 1041409   ;;  %vm1644_vm7 = vcmask 1042434  }
  0x10   :  { %v2753_v50 = vpack.c.bf16 %v827_v47, %v820_v46  ;;  %v2759_v56 = vpack.c.bf16 %v841_v54, %v834_v53  ;;  %vm1646_vm8 = vcmask 1043459   ;;  %vm1648_vm9 = vcmask 130048  }
  0x11   :  { %v58_v21 = vsel %vm57_vm2, %v56_v20, 0  ;;  %vm2139_vm10 = vcmask 24576  }
  0x12   :  { %v130_v23 = vand.u32 4294901760, %v58_v21  ;;  %2521 = vmatprep.subr.bf16.mxu1 %v2753_v50 }
  0x13   :  { %2523 = vmatpush3.bf16.msra.mxu1 %v2753_v50 }
  0x14   :  { %v131_v24 = vsub.f32 %v58_v21, %v130_v23  ;;  %2522 = vmatprep.subr.bf16.mxu1 %v2759_v56 }
  0x16   :  { %v132_v26 = vand.u32 4294901760, %v131_v24 }
  0x17   :  { %2524 = vmatpush3.bf16.msra.mxu1 %v2759_v56 }
  0x18   :  { %v133_v27 = vsub.f32 %v131_v24, %v132_v26  ;;  %2472 = vmatprep.subr.bf16.mxu1 %v2765_v57 }
  0x1a   :  { %v134_v29 = vand.u32 4294901760, %v133_v27 }
  0x1c   :  { %2266 = vmatmul.mubr.f32.vlgmr.msra.gmra.mrb[0].mxu0 %v134_v29 }
  0x1d   :  { %2269 = vmatpush3.msra.mxu0 %v145_v28  ;;  %2270 = vmatprep.mubr.msk.f32.mxu0 %vm2658_vm1, %v2657_v2 }
  0x1e   :  { %2273 = vmatprep.subr.mxu0 %v2657_v2 }
  0x24   :  { %2271 = vmatmul.mubr.f32.vlgmr.msra.gmra.mrb[0].mxu0 %v130_v23 }
  0x25   :  { %2274 = vmatpush3.msra.mxu0 %v142_v18  ;;  %2275 = vmatprep.mubr.msk.f32.mxu0 %vm2658_vm1, %v2657_v2 }
  0x26   :  { %2278 = vmatprep.subr.mxu0 %v2657_v2 }
  0x2c   :  { %2276 = vmatmul.mubr.f32.vlgmr.msra.gmra.mrb[0].mxu0 %v131_v24 }
  0x2d   :  { %2279 = vmatpush3.msra.mxu0 %v65_v5  ;;  %2280 = vmatprep.mubr.msk.f32.mxu0 %vm2658_vm1, %v2657_v2 }
  0x2e   :  { %2283 = vmatprep.subr.mxu0 %v2657_v2 }
  0x34   :  { %2281 = vmatmul.mubr.f32.vlgmr.msra.gmra.mrb[0].mxu0 %v132_v26 }
  0x35   :  { %2284 = vmatpush3.msra.mxu0 %v143_v22  ;;  %2285 = vmatprep.mubr.msk.f32.mxu0 %vm2658_vm1, %v2657_v2 }
  0x36   :  { %2288 = vmatprep.subr.mxu0 %v2657_v2 }
  0x3c   :  { %2286 = vmatmul.mubr.f32.vlgmr.msra.gmra.mrb[0].mxu0 %v130_v23 }
  0x3d   :  { %2289 = vmatpush3.msra.mxu0 %v65_v5  ;;  %2290 = vmatprep.mubr.msk.f32.mxu0 %vm2658_vm1, %v2657_v2 }
  0x3e   :  { %2456 = vmatprep.subr.bf16.mxu0 %v2756_v55 }
  0x44   :  { %2291 = vmatmul.mubr.f32.vlgmr.msra.gmra.mrb[0].mxu0 %v130_v23 }
  0x45   :  { %2458 = vmatpush3.bf16.msra.mxu0 %v2756_v55 }
  0x46   :  { %2460 = vmatprep.subr.bf16.mxu0 %v2768_v58 }
  0x49   :  { %2462 = vmatpush3.bf16.msra.mxu0 %v2768_v58 }
  0x4a   :  { %2464 = vmatprep.subr.bf16.mxu0 %v2753_v50 }
 0x117   :  { %v506_v62 = vpop.f32.mrb[0].mxu0 }
 0x118   :  { %v517_v63 = vrot.slane %v506_v62, %v2722_v15  ;;  %v2292_v3 = vpop.f32.mrb[1].mxu0 }
 0x11a   :  { %v518_v4 = vcombine.high %v517_v63, %v517_v63  ;;  %v525_v5 = vrot.slane %v517_v63, %v2722_v15 }
 0x11c   :  { %v532_v7 = vrot.slane %v518_v4, %v2722_v15  ;;  %v533_v8 = vcombine.high %v525_v5, %v525_v5  ;;  %v540_v10 = vrot.slane %v525_v5, %v539_v0 }
 0x11e   :  { %v534_v12 = vcombine.high %v532_v7, %v532_v7  ;;  %v544_v13 = vrot.slane %v532_v7, %v539_v0  ;;  %v548_v14 = vrot.slane %v533_v8, %v539_v0  ;;  %v2789_v16 = vadd.f32 %v540_v10, %v535_v6 }
 0x11f   :  { %v2791_v17 = vadd.f32 %v540_v10, %v536_v9 }
 0x120   :  { %v552_v18 = vrot.slane %v534_v12, %v539_v0  ;;  %v2793_v19 = vadd.f32 %v544_v13, %v535_v6  ;;  %v2795_v20 = vadd.f32 %v544_v13, %v536_v9  ;;  %v2797_v21 = vadd.f32 %v548_v14, %v535_v6 }
 0x121   :  { %v2799_v22 = vadd.f32 %v548_v14, %v536_v9  ;;  %v565_v23 = vmul.f32 %v2789_v16, %v2789_v16  ;;  %v566_v24 = vmul.f32 %v2791_v17, %v2791_v17 }
 0x122   :  { %v2805_v25 = vadd.f32 %v552_v18, %v535_v6  ;;  %v2807_v26 = vadd.f32 %v552_v18, %v536_v9  ;;  %v567_v27 = vmul.f32 %v2793_v19, %v2793_v19  ;;  %v568_v28 = vmul.f32 %v2795_v20, %v2795_v20 }
 0x123   :  { %v569_v29 = vmul.f32 %v2797_v21, %v2797_v21  ;;  %v570_v30 = vmul.f32 %v2799_v22, %v2799_v22  ;;  %v573_v31 = vmul.f32 %v565_v23, %v2789_v16  ;;  %v574_v32 = vmul.f32 %v566_v24, %v2791_v17 }
 0x124   :  { %v571_v33 = vmul.f32 %v2805_v25, %v2805_v25  ;;  %v572_v34 = vmul.f32 %v2807_v26, %v2807_v26  ;;  %v575_v35 = vmul.f32 %v567_v27, %v2793_v19  ;;  %v576_v36 = vmul.f32 %v568_v28, %v2795_v20 }
 0x125   :  { %v577_v37 = vmul.f32 %v569_v29, %v2797_v21  ;;  %v578_v38 = vmul.f32 %v570_v30, %v2799_v22  ;;  %v581_v39 = vmul.f32 0.044715, %v573_v31  ;;  %v582_v40 = vmul.f32 0.044715, %v574_v32 }
 0x126   :  { %v579_v41 = vmul.f32 %v571_v33, %v2805_v25  ;;  %v580_v42 = vmul.f32 %v572_v34, %v2807_v26  ;;  %v583_v43 = vmul.f32 0.044715, %v575_v35  ;;  %v584_v48 = vmul.f32 0.044715, %v576_v36 }
 0x127   :  { %v585_v44 = vmul.f32 0.044715, %v577_v37  ;;  %v586_v45 = vmul.f32 0.044715, %v578_v38  ;;  %v589_v46 = vadd.f32 %v581_v39, %v2789_v16  ;;  %v590_v47 = vadd.f32 %v582_v40, %v2791_v17 }
 0x128   :  { %v591_v49 = vadd.f32 %v583_v43, %v2793_v19  ;;  %v587_v51 = vmul.f32 0.044715, %v579_v41  ;;  %v588_v52 = vmul.f32 0.044715, %v580_v42  ;;  %v592_v6 = vadd.f32 %v584_v48, %v2795_v20 }
 0x129   :  { %v593_v53 = vadd.f32 %v585_v44, %v2797_v21  ;;  %v594_v54 = vadd.f32 %v586_v45, %v2799_v22  ;;  %v597_v62 = vmul.f32 0.7978846, %v589_v46  ;;  %v598_v63 = vmul.f32 0.7978846, %v590_v47 }
 0x12a   :  { %v595_v0 = vadd.f32 %v587_v51, %v2805_v25  ;;  %v596_v3 = vadd.f32 %v588_v52, %v2807_v26  ;;  %v599_v9 = vmul.f32 0.7978846, %v591_v49  ;;  %v600_v10 = vmul.f32 0.7978846, %v592_v6 }
 0x12b   :  { %2593 = vtanh.f32 %v597_v62  ;;  %v601_v4 = vmul.f32 0.7978846, %v593_v53  ;;  %v602_v5 = vmul.f32 0.7978846, %v594_v54 }
 0x12c   :  { %2595 = vtanh.f32 %v598_v63  ;;  %v603_v7 = vmul.f32 0.7978846, %v595_v0  ;;  %v604_v8 = vmul.f32 0.7978846, %v596_v3 }
 0x12d   :  { %2597 = vtanh.f32 %v601_v4 }
 0x12e   :  { %2599 = vtanh.f32 %v602_v5 }
 0x12f   :  { %2601 = vtanh.f32 %v603_v7 }
 0x130   :  { %2603 = vtanh.f32 %v604_v8 }
 0x131   :  { %2605 = vtanh.f32 %v599_v9 }
 0x132   :  { %2607 = vtanh.f32 %v600_v10 }
 0x135   :  { %v2594_v12 = vpop.eup %2593 }
 0x136   :  { %v2596_v13 = vpop.eup %2595  ;;  %v613_v14 = vadd.f32 1.0, %v2594_v12 }
 0x137   :  { %v2598_v18 = vpop.eup %2597  ;;  %v614_v23 = vadd.f32 1.0, %v2596_v13 }
 0x138   :  { %v2600_v24 = vpop.eup %2599  ;;  %v617_v27 = vadd.f32 1.0, %v2598_v18  ;;  %v621_v28 = vmul.f32 0.5, %v613_v14 }
 0x139   :  { %v2602_v29 = vpop.eup %2601  ;;  %v622_v30 = vmul.f32 0.5, %v614_v23  ;;  %v618_v31 = vadd.f32 1.0, %v2600_v24 }
 0x13a   :  { %v2604_v32 = vpop.eup %2603  ;;  %v625_v33 = vmul.f32 0.5, %v617_v27  ;;  %v619_v34 = vadd.f32 1.0, %v2602_v29  ;;  %v629_v35 = vmul.f32 %v621_v28, %v2789_v16 }
 0x13b   :  { %v2606_v36 = vpop.eup %2605  ;;  %v630_v37 = vmul.f32 %v622_v30, %v2791_v17  ;;  %v626_v38 = vmul.f32 0.5, %v618_v31  ;;  %v620_v39 = vadd.f32 1.0, %v2604_v32 }
 0x13c   :  { %v633_v40 = vmul.f32 %v625_v33, %v2797_v21  ;;  %v627_v41 = vmul.f32 0.5, %v619_v34  ;;  %v643_v42 = vsel %vm641_vm3, %v629_v35, 0  ;;  %v615_v43 = vadd.f32 1.0, %v2606_v36  ;;  %v2608_v48 = vpop.eup %2607 }
 0x13d   :  { %v634_v44 = vmul.f32 %v626_v38, %v2799_v22  ;;  %v628_v45 = vmul.f32 0.5, %v620_v39  ;;  %v2842_v46 = vand.u32 4294901760, %v643_v42  ;;  %v646_v47 = vsel %vm641_vm3, %v630_v37, 0 }
 0x13e   :  { %v655_v16 = vsel %vm641_vm3, %v633_v40, 0  ;;  %v635_v17 = vmul.f32 %v627_v41, %v2805_v25  ;;  %v2847_v49 = vand.u32 4294901760, %v646_v47  ;;  %v623_v51 = vmul.f32 0.5, %v615_v43 }
 0x13f   :  { %v2849_v21 = vand.u32 4294901760, %v655_v16  ;;  %v658_v52 = vsel %vm641_vm3, %v634_v44, 0  ;;  %v636_v53 = vmul.f32 %v628_v45, %v2807_v26  ;;  %v2854_v22 = vsub.f32 %v643_v42, %v2842_v46 }
 0x140   :  { %v2856_v54 = vand.u32 4294901760, %v658_v52  ;;  %v661_v62 = vsel %vm641_vm3, %v635_v17, 0  ;;  %v2860_v63 = vsub.f32 %v646_v47, %v2847_v49  ;;  %v631_v25 = vmul.f32 %v623_v51, %v2793_v19 }
 0x141   :  { %2327 = vmatprep.mubr.f32.mxu1 %v2849_v21  ;;  %v2864_v0 = vand.u32 4294901760, %v661_v62  ;;  %v664_v3 = vsel %vm641_vm3, %v636_v53, 0  ;;  %v737_v26 = vand.u32 4294901760, %v2854_v22  ;;  %v616_v4 = vadd.f32 1.0, %v2608_v48 }
 0x142   :  { %2328 = vmatmul.mubr.f32.vlgmr.msra.gmra.mrb[0].mxu1 %v2856_v54  ;;  %v747_v5 = vand.u32 4294901760, %v2860_v63  ;;  %v649_v6 = vsel %vm641_vm3, %v631_v25, 0  ;;  %v2879_v9 = vand.u32 4294901760, %v664_v3  ;;  %v776_v14 = vsub.f32 %v655_v16, %v2849_v21 }
 0x143   :  { %2474 = vmatpush3.bf16.msra.mxu1 %v2765_v57  ;;  %2330 = vmatprep.mubr.f32.mxu1 %v2864_v0  ;;  %v738_v19 = vsub.f32 %v2854_v22, %v737_v26  ;;  %v2876_v7 = vand.u32 4294901760, %v649_v6  ;;  %v624_v8 = vmul.f32 0.5, %v616_v4  ;;  %v786_v28 = vsub.f32 %v658_v52, %v2856_v54 }
 0x144   :  { %2476 = vmatprep.subr.bf16.mxu1 %v2770_v59  ;;  %v748_v10 = vsub.f32 %v2860_v63, %v747_v5  ;;  %v796_v30 = vsub.f32 %v661_v62, %v2864_v0  ;;  %v806_v34 = vsub.f32 %v664_v3, %v2879_v9 }
 0x145   :  { %v739_v12 = vand.u32 4294901760, %v738_v19  ;;  %v756_v57 = vsub.f32 %v649_v6, %v2876_v7  ;;  %v632_v13 = vmul.f32 %v624_v8, %v2795_v20  ;;  %v777_v20 = vand.u32 4294901760, %v776_v14 }
 0x146   :  { %2331 = vmatmul.mubr.f32.gmra.mrb[2].mxu1 %v2879_v9  ;;  %v749_v18 = vand.u32 4294901760, %v748_v10  ;;  %v787_v33 = vand.u32 4294901760, %v786_v28  ;;  %v797_v36 = vand.u32 4294901760, %v796_v30  ;;  %v807_v39 = vand.u32 4294901760, %v806_v34 }
 0x147   :  { %2478 = vmatpush3.bf16.msra.mxu1 %v2770_v59  ;;  %2301 = vmatprep.mubr.f32.mxu0 %v739_v12  ;;  %v757_v23 = vand.u32 4294901760, %v756_v57  ;;  %v652_v24 = vsel %vm641_vm3, %v632_v13, 0  ;;  %v778_v35 = vsub.f32 %v776_v14, %v777_v20 }
 0x148   :  { %2341 = vmatprep.mubr.f32.mxu1 %v2854_v22  ;;  %2302 = vmatmul.mubr.f32.vlgmr.msra.gmra.mrb[2].mxu0 %v749_v18  ;;  %v2891_v27 = vand.u32 4294901760, %v652_v24  ;;  %v788_v38 = vsub.f32 %v786_v28, %v787_v33  ;;  %v798_v41 = vsub.f32 %v796_v30, %v797_v36  ;;  %v808_v43 = vsub.f32 %v806_v34, %v807_v39 }
 0x149   :  { %v758_v29 = vsub.f32 %v756_v57, %v757_v23  ;;  %2480 = vmatprep.subr.bf16.mxu1 %v2756_v55  ;;  %2466 = vmatpush3.bf16.msra.mxu0 %v2753_v50  ;;  %v779_v40 = vand.u32 4294901760, %v778_v35 }
 0x14a   :  { %2342 = vmatmul.mubr.f32.vlgmr.msra.gmra.mrb[4].mxu1 %v2860_v63  ;;  %v766_v59 = vsub.f32 %v652_v24, %v2891_v27  ;;  %2468 = vmatprep.subr.bf16.mxu0 %v2759_v56  ;;  %v789_v42 = vand.u32 4294901760, %v788_v38  ;;  %v799_v44 = vand.u32 4294901760, %v798_v41 }
 0x14b   :  { %v759_v31 = vand.u32 4294901760, %v758_v29  ;;  %2482 = vmatpush3.bf16.msra.mxu1 %v2756_v55  ;;  %2344 = vmatprep.mubr.f32.mxu1 %v756_v57 }
 0x14c   :  { %v767_v32 = vand.u32 4294901760, %v766_v59  ;;  %2484 = vmatprep.subr.bf16.mxu1 %v2768_v58 }
 0x14d   :  { %2304 = vmatprep.mubr.f32.mxu0 %v759_v31  ;;  %2470 = vmatpush3.bf16.msra.mxu0 %v2759_v56  ;;  %v809_v56 = vand.u32 4294901760, %v808_v43 }
 0x14e   :  { %v768_v50 = vsub.f32 %v766_v59, %v767_v32  ;;  %2345 = vmatmul.mubr.f32.gmra.mrb[6].mxu1 %v766_v59 }
 0x14f   :  { %2347 = vmatprep.mubr.f32.mxu1 %v776_v14  ;;  %2486 = vmatpush3.bf16.msra.mxu1 %v2768_v58 }
 0x150   :  { %v769_v37 = vand.u32 4294901760, %v768_v50  ;;  %2488 = vmatprep.subr.bf16.mxu1 %v2775_v60 }
 0x152   :  { %2305 = vmatmul.mubr.f32.gmra.mrb[4].mxu0 %v769_v37  ;;  %2348 = vmatmul.mubr.f32.gmra.mrb[0].mxu1 %v786_v28 }
 0x153   :  { %2307 = vmatprep.mubr.f32.mxu0 %v779_v40  ;;  %2350 = vmatprep.mubr.f32.mxu1 %v796_v30 }
 0x156   :  { %2308 = vmatmul.mubr.f32.gmra.mrb[6].mxu0 %v789_v42  ;;  %2351 = vmatmul.mubr.f32.gmra.mrb[2].mxu1 %v806_v34 }
 0x157   :  { %2310 = vmatprep.mubr.f32.mxu0 %v799_v44  ;;  %2361 = vmatprep.mubr.f32.mxu1 %v737_v26 }
 0x15a   :  { %2311 = vmatmul.mubr.f32.gmra.mrb[8].mxu0 %v809_v56  ;;  %2362 = vmatmul.mubr.f32.vlgmr.msra.gmra.mrb[4].mxu1 %v747_v5 }
 0x15b   :  { %2321 = vmatprep.mubr.f32.mxu0 %v2842_v46  ;;  %2490 = vmatpush3.bf16.msra.mxu1 %v2775_v60 }
 0x15c   :  { %2364 = vmatprep.mubr.f32.mxu1 %v757_v23  ;;  %2492 = vmatprep.subr.bf16.mxu1 %v2777_v61 }
 0x15e   :  { %2322 = vmatmul.mubr.f32.vlgmr.msra.gmra.mrb[2].mxu0 %v2847_v49  ;;  %2365 = vmatmul.mubr.f32.gmra.mrb[6].mxu1 %v767_v32 }
 0x15f   :  { %2324 = vmatprep.mubr.f32.mxu0 %v2876_v7  ;;  %2367 = vmatprep.mubr.f32.mxu1 %v777_v20 }
 0x160   :  { %2494 = vmatpush3.bf16.msra.mxu1 %v2777_v61 }
 0x161   :  { %2496 = vmatprep.subr.bf16.mxu1 %v2756_v55 }
 0x162   :  { %2325 = vmatmul.mubr.f32.gmra.mrb[4].mxu0 %v2891_v27  ;;  %2368 = vmatmul.mubr.f32.gmra.mrb[0].mxu1 %v787_v33 }
 0x163   :  { %2370 = vmatprep.mubr.f32.mxu1 %v797_v36  ;;  %2417 = vmatprep.mubr.msk.f32.mxu0 %vm2658_vm1, %v2657_v2 }
 0x166   :  { %2371 = vmatmul.mubr.f32.gmra.mrb[2].mxu1 %v807_v39 }
 0x167   :  { %2381 = vmatprep.mubr.f32.mxu1 %v2842_v46 }
 0x16a   :  { %2382 = vmatmul.mubr.f32.vlgmr.msra.gmra.mrb[4].mxu1 %v2847_v49 }
 0x16b   :  { %2498 = vmatpush3.bf16.msra.mxu1 %v2756_v55  ;;  %2384 = vmatprep.mubr.f32.mxu1 %v2876_v7 }
 0x16c   :  { %2500 = vmatprep.subr.bf16.mxu1 %v2768_v58 }
 0x16e   :  { %2385 = vmatmul.mubr.f32.gmra.mrb[6].mxu1 %v2891_v27 }
 0x16f   :  { %2387 = vmatprep.mubr.f32.mxu1 %v2849_v21  ;;  %2502 = vmatpush3.bf16.msra.mxu1 %v2768_v58 }
 0x172   :  { %2388 = vmatmul.mubr.f32.gmra.mrb[0].mxu1 %v2856_v54 }
 0x173   :  { %2390 = vmatprep.mubr.f32.mxu1 %v2864_v0 }
 0x176   :  { %2391 = vmatmul.mubr.f32.gmra.mrb[2].mxu1 %v2879_v9 }
 0x177   :  { %2401 = vmatprep.mubr.f32.mxu1 %v2842_v46 }
 0x17a   :  { %2402 = vmatmul.mubr.f32.vlgmr.msra.gmra.mrb[4].mxu1 %v2847_v49 }
 0x17b   :  { %2404 = vmatprep.mubr.f32.mxu1 %v2876_v7 }
 0x17e   :  { %2405 = vmatmul.mubr.f32.gmra.mrb[6].mxu1 %v2891_v27 }
 0x17f   :  { %2407 = vmatprep.mubr.f32.mxu1 %v2849_v21 }
 0x182   :  { %2408 = vmatmul.mubr.f32.gmra.mrb[0].mxu1 %v2856_v54 }
 0x183   :  { %2410 = vmatprep.mubr.f32.mxu1 %v2864_v0 }
 0x186   :  { %2411 = vmatmul.mubr.f32.gmra.mrb[2].mxu1 %v2879_v9 }
 0x229   :  { %v2309_v55 = vpop.f32.mrb[6].mxu0 }
 0x22a   :  { %v781_v58 = vpop.f32.mrb[7].mxu0 }
 0x22d   :  { %v2312_v60 = vpop.f32.mrb[8].mxu0 }
 0x22e   :  { %v801_v61 = vpop.f32.mrb[9].mxu0 }
 0x231   :  { %v2323_v45 = vpop.f32.mrb[2].mxu0 }
 0x232   :  { %v902_v46 = vpop.f32.mrb[3].mxu0 }
 0x235   :  { %v2326_v47 = vpop.f32.mrb[4].mxu0 }
 0x236   :  { %v914_v48 = vpop.f32.mrb[5].mxu0 }
 0x24d   :  { %v2403_v16 = vpop.f32.mrb[4].mxu1 }
 0x24e   :  { %v2525_v17 = vadd.f32 %v2403_v16, %v2323_v45  ;;  %v1406_v49 = vpop.f32.mrb[5].mxu1 }
 0x24f   :  { %v2526_v51 = vadd.f32 %v1406_v49, %v902_v46 }
 0x250   :  { %v1454_v21 = vsel %vm1452_vm4, %v2525_v17, -inf }
 0x251   :  { %v1453_v52 = vsel %vm1452_vm4, %v2526_v51, -inf  ;;  %v2406_v53 = vpop.f32.mrb[6].mxu1 }
 0x252   :  { %v1455_v22 = vmax.f32 %v1453_v52, %v1454_v21  ;;  %v2527_v54 = vadd.f32 %v2406_v53, %v2326_v47  ;;  %v1418_v62 = vpop.f32.mrb[7].mxu1 }
 0x253   :  { %v2528_v63 = vadd.f32 %v1418_v62, %v914_v48 }
 0x254   :  { %v1456_v25 = vrot.slane %v1455_v22, 4  ;;  %v1463_v0 = vsel %vm1452_vm4, %v2527_v54, -inf }
 0x255   :  { %v1462_v3 = vsel %vm1452_vm4, %v2528_v63, -inf  ;;  %v2409_v26 = vpop.f32.mrb[0].mxu1 }
 0x256   :  { %v1457_v4 = vmax.f32 %v1455_v22, %v1456_v25  ;;  %v1464_v5 = vmax.f32 %v1462_v3, %v1463_v0  ;;  %v2529_v6 = vadd.f32 %v2409_v26, %v2309_v55  ;;  %v1430_v19 = vpop.f32.mrb[1].mxu1 }
 0x257   :  { %v2530_v7 = vadd.f32 %v1430_v19, %v781_v58 }
 0x258   :  { %v1458_v8 = vrot.slane %v1457_v4, 2  ;;  %v1465_v9 = vrot.slane %v1464_v5, 4  ;;  %v1472_v10 = vsel %vm1452_vm4, %v2529_v6, -inf }
 0x259   :  { %v1471_v12 = vsel %vm1452_vm4, %v2530_v7, -inf  ;;  %v2412_v57 = vpop.f32.mrb[2].mxu1 }
 0x25a   :  { %v1459_v13 = vmax.f32 %v1457_v4, %v1458_v8  ;;  %v1466_v14 = vmax.f32 %v1464_v5, %v1465_v9  ;;  %v1473_v18 = vmax.f32 %v1471_v12, %v1472_v10  ;;  %v2531_v23 = vadd.f32 %v2412_v57, %v2312_v60  ;;  %v1442_v24 = vpop.f32.mrb[3].mxu1 }
 0x25b   :  { %v2532_v27 = vadd.f32 %v1442_v24, %v801_v61 }
 0x25c   :  { %v1460_v28 = vrot.slane %v1459_v13, 1  ;;  %v1467_v29 = vrot.slane %v1466_v14, 2  ;;  %v1474_v20 = vrot.slane %v1473_v18, 4  ;;  %v1481_v30 = vsel %vm1452_vm4, %v2531_v23, -inf }
 0x25d   :  { %v1480_v59 = vsel %vm1452_vm4, %v2532_v27, -inf }
 0x25e   :  { %v1461_v31 = vmax.f32 %v1459_v13, %v1460_v28  ;;  %v1468_v32 = vmax.f32 %v1466_v14, %v1467_v29  ;;  %v1475_v33 = vmax.f32 %v1473_v18, %v1474_v20  ;;  %v1482_v34 = vmax.f32 %v1480_v59, %v1481_v30 }
 0x260   :  { %v1489_v35 = vsub.f32 %v2526_v51, %v1461_v31  ;;  %v1490_v36 = vsub.f32 %v2525_v17, %v1461_v31  ;;  %v1469_v50 = vrot.slane %v1468_v32, 1  ;;  %v1476_v37 = vrot.slane %v1475_v33, 2 }
 0x261   :  { %v1483_v38 = vrot.slane %v1482_v34, 4 }
 0x262   :  { %v1497_v39 = vmul.f32 1.442695, %v1489_v35  ;;  %v1499_v40 = vmul.f32 1.442695, %v1490_v36  ;;  %v1470_v41 = vmax.f32 %v1468_v32, %v1469_v50  ;;  %v1477_v42 = vmax.f32 %v1475_v33, %v1476_v37 }
 0x263   :  { %v1484_v43 = vmax.f32 %v1482_v34, %v1483_v38 }
 0x264   :  { %2609 = vpow2.f32 %v1497_v39  ;;  %v1491_v44 = vsub.f32 %v2528_v63, %v1470_v41  ;;  %v1492_v56 = vsub.f32 %v2527_v54, %v1470_v41  ;;  %v1478_v55 = vrot.slane %v1477_v42, 1 }
 0x265   :  { %2611 = vpow2.f32 %v1499_v40  ;;  %v1485_v58 = vrot.slane %v1484_v43, 2 }
 0x266   :  { %v1501_v60 = vmul.f32 1.442695, %v1491_v44  ;;  %v1503_v61 = vmul.f32 1.442695, %v1492_v56  ;;  %v1479_v45 = vmax.f32 %v1477_v42, %v1478_v55 }
 0x267   :  { %v1486_v46 = vmax.f32 %v1484_v43, %v1485_v58 }
 0x268   :  { %2613 = vpow2.f32 %v1501_v60  ;;  %v1493_v47 = vsub.f32 %v2530_v7, %v1479_v45  ;;  %v1494_v48 = vsub.f32 %v2529_v6, %v1479_v45 }
 0x269   :  { %2615 = vpow2.f32 %v1503_v61  ;;  %v1487_v16 = vrot.slane %v1486_v46, 1 }
 0x26a   :  { %v1505_v17 = vmul.f32 1.442695, %v1493_v47  ;;  %v1507_v49 = vmul.f32 1.442695, %v1494_v48 }
 0x26b   :  { %v1488_v51 = vmax.f32 %v1486_v46, %v1487_v16 }
 0x26c   :  { %2617 = vpow2.f32 %v1505_v17 }
 0x26d   :  { %2619 = vpow2.f32 %v1507_v49  ;;  %v1495_v21 = vsub.f32 %v2532_v27, %v1488_v51  ;;  %v1496_v52 = vsub.f32 %v2531_v23, %v1488_v51 }
 0x26e   :  { %v2610_v53 = vpop.eup %2609 }
 0x26f   :  { %v2612_v22 = vpop.eup %2611  ;;  %v1513_v54 = vsel %vm1452_vm4, %v2610_v53, 0.0  ;;  %v1509_v62 = vmul.f32 1.442695, %v1495_v21  ;;  %v1511_v63 = vmul.f32 1.442695, %v1496_v52 }
 0x270   :  { %v1514_v25 = vsel %vm1452_vm4, %v2612_v22, 0.0 }
 0x271   :  { %v1515_v0 = vadd.f32 %v1514_v25, %v1513_v54  ;;  %2621 = vpow2.f32 %v1509_v62 }
 0x272   :  { %v2614_v3 = vpop.eup %2613  ;;  %2623 = vpow2.f32 %v1511_v63 }
 0x273   :  { %v2616_v26 = vpop.eup %2615  ;;  %v1516_v4 = vrot.slane %v1515_v0, 4  ;;  %v1522_v5 = vsel %vm1452_vm4, %v2614_v3, 0.0 }
 0x274   :  { %v1523_v6 = vsel %vm1452_vm4, %v2616_v26, 0.0 }
 0x275   :  { %v1524_v19 = vadd.f32 %v1523_v6, %v1522_v5  ;;  %v1517_v7 = vadd.f32 %v1516_v4, %v1515_v0  ;;  %v1585_v0 = vld [vmem:[%s3019_s4] sm:$0xff] }
 0x276   :  { %v2618_v8 = vpop.eup %2617  ;;  %v1652_v4 = vand.u32 4294901760, %v1585_v0 }
 0x277   :  { %v2620_v9 = vpop.eup %2619  ;;  %v1525_v10 = vrot.slane %v1524_v19, 4  ;;  %v1531_v12 = vsel %vm1452_vm4, %v2618_v8, 0.0  ;;  %v1518_v57 = vrot.slane %v1517_v7, 2 }
 0x278   :  { %v1532_v13 = vsel %vm1452_vm4, %v2620_v9, 0.0 }
 0x279   :  { %v1533_v14 = vadd.f32 %v1532_v13, %v1531_v12  ;;  %v1519_v18 = vadd.f32 %v1518_v57, %v1517_v7  ;;  %v1526_v23 = vadd.f32 %v1525_v10, %v1524_v19  ;;  %v1730_v19 = vsub.f32 %v1585_v0, %v1652_v4 }
 0x27b   :  { %v2622_v24 = vpop.eup %2621  ;;  %v1534_v27 = vrot.slane %v1533_v14, 4  ;;  %v1520_v28 = vrot.slane %v1519_v18, 1  ;;  %v1527_v29 = vrot.slane %v1526_v23, 2 }
 0x27c   :  { %v2624_v20 = vpop.eup %2623  ;;  %v1540_v30 = vsel %vm1452_vm4, %v2622_v24, 0.0 }
 0x27d   :  { %v1535_v59 = vadd.f32 %v1534_v27, %v1533_v14  ;;  %v1541_v31 = vsel %vm1452_vm4, %v2624_v20, 0.0  ;;  %v1521_v32 = vadd.f32 %v1520_v28, %v1519_v18  ;;  %v1528_v33 = vadd.f32 %v1527_v29, %v1526_v23 }
 0x27e   :  { %v1542_v34 = vadd.f32 %v1541_v31, %v1540_v30  ;;  %v1603_v27 = vand.u32 127, %v38_v1 }
 0x27f   :  { %2625 = vrcp.f32 %v1521_v32  ;;  %v1529_v35 = vrot.slane %v1528_v33, 1  ;;  %v1536_v36 = vrot.slane %v1535_v59, 2 }
 0x280   :  { %v1543_v50 = vrot.slane %v1542_v34, 4  ;;  %v1606_v32 = vsub.s32 %v1603_v27, %v2718_v11 }
 0x281   :  { %v1530_v37 = vadd.f32 %v1529_v35, %v1528_v33  ;;  %v1537_v38 = vadd.f32 %v1536_v36, %v1535_v59 }
 0x282   :  { %v1544_v39 = vadd.f32 %v1543_v50, %v1542_v34 }
 0x283   :  { %2627 = vrcp.f32 %v1530_v37  ;;  %v1538_v40 = vrot.slane %v1537_v38, 1 }
 0x284   :  { %v1545_v41 = vrot.slane %v1544_v39, 2 }
 0x285   :  { %v1539_v42 = vadd.f32 %v1538_v40, %v1537_v38 }
 0x286   :  { %v1546_v43 = vadd.f32 %v1545_v41, %v1544_v39 }
 0x287   :  { %2629 = vrcp.f32 %v1539_v42 }
 0x288   :  { %v1547_v44 = vrot.slane %v1546_v43, 1 }
 0x289   :  { %v2626_v56 = vpop.eup %2625 }
 0x28a   :  { %v1553_v55 = vmul.f32 %v2626_v56, %v2610_v53  ;;  %v1554_v58 = vmul.f32 %v2626_v56, %v2612_v22  ;;  %v1548_v60 = vadd.f32 %v1547_v44, %v1546_v43 }
 0x28c   :  { %v1561_v61 = vsel %vm1452_vm4, %v1553_v55, 0.0  ;;  %2631 = vrcp.f32 %v1548_v60  ;;  %v1564_v48 = vsel %vm1452_vm4, %v1554_v58, 0.0 }
 0x28d   :  { %v2628_v45 = vpop.eup %2627  ;;  %1562 = vadd.xlane.f32.xlu0 %v1561_v61 }
 0x28e   :  { %v1555_v46 = vmul.f32 %v2628_v45, %v2614_v3  ;;  %v1556_v47 = vmul.f32 %v2628_v45, %v2616_v26  ;;  %v1586_v3 = vld [vmem:[%s3019_s4 + $0x8] sm:$0xff]  ;;  %v2660_v26 = vmov 0.0|0.0  }
 0x28f   :  { %2503 = vmatprep.subr.bf16.mxu0 %v2660_v26  ;;  %v1655_v5 = vand.u32 4294901760, %v1586_v3 }
 0x290   :  { %v1567_v16 = vsel %vm1452_vm4, %v1555_v46, 0.0  ;;  %v1570_v52 = vsel %vm1452_vm4, %v1556_v47, 0.0 }
 0x291   :  { %v2630_v17 = vpop.eup %2629  ;;  %1565 = vadd.xlane.f32.xlu0 %v1564_v48  ;;  %1568 = vadd.xlane.f32.xlu1 %v1567_v16  ;;  %v2970_v6 = vpack.c.bf16 %v1655_v5, %v1652_v4  ;;  %v1737_v7 = vsub.f32 %v1586_v3, %v1655_v5  ;;  %v2160_v16 = vld [vmem:[%s3020_s5] ss:$0 sm:$0xff]  ;;  %s2633_s5 = scalar_lea.vmem %s2150_s21, 64 }
 0x292   :  { %v1557_v49 = vmul.f32 %v2630_v17, %v2618_v8  ;;  %v1558_v51 = vmul.f32 %v2630_v17, %v2620_v9  ;;  %v1731_v8 = vand.u32 4294901760, %v1730_v19  ;;  %p2634_p0 = scmp.ne.s32.totalorder %s2150_s21, %s2633_s5  ;;  %p2639_p2 = scmp.lt.s32.totalorder %s2633_s5, %s2633_s5 }
 0x293   :  { %2505 = vmatpush3.bf16.msra.mxu0 %v2970_v6  ;;  %v1738_v9 = vand.u32 4294901760, %v1737_v7  ;;  %v2510_v18 = vpack.c.bf16 %v1737_v7, %v1730_v19 }
 0x294   :  { %v1573_v21 = vsel %vm1452_vm4, %v1557_v49, 0.0  ;;  %v1576_v62 = vsel %vm1452_vm4, %v1558_v51, 0.0  ;;  %2506 = vmatprep.subr.bf16.mxu0 %v2660_v26  ;;  %v1732_v10 = vsub.f32 %v1730_v19, %v1731_v8  ;;  %p2640_p3 = por %p2639_p2, %p2638_p1 }
 0x295   :  { %1574 = vadd.xlane.f32.xlu0 %v1573_v21  ;;  %1571 = vadd.xlane.f32.xlu1 %v1570_v52  ;;  %v1739_v12 = vsub.f32 %v1737_v7, %v1738_v9  ;;  %v2516_v23 = vpack.c.bf16 %v1738_v9, %v1731_v8 }
 0x296   :  { %v2632_v53 = vpop.eup %2631  ;;  %v1733_v57 = vand.u32 4294901760, %v1732_v10  ;;  %p2641_p4 = pnand %p2640_p3, %p2634_p0 }
 0x297   :  { %v1559_v22 = vmul.f32 %v2632_v53, %v2622_v24  ;;  %v1560_v54 = vmul.f32 %v2632_v53, %v2624_v20  ;;  %v1740_v13 = vand.u32 4294901760, %v1739_v12  ;;  %v1608_v20 = vadd.s32 4294967288, %v1603_v27 }
 0x299   :  { %v1579_v63 = vsel %vm1452_vm4, %v1559_v22, 0.0  ;;  %1577 = vadd.xlane.f32.xlu1 %v1576_v62  ;;  %v1582_v25 = vsel %vm1452_vm4, %v1560_v54, 0.0  ;;  %v2507_v14 = vpack.c.bf16 %v1740_v13, %v1733_v57  ;;  %v1611_v31 = vsub.s32 %v1608_v20, %v2718_v11 }
 0x29a   :  { %1580 = vadd.xlane.f32.xlu0 %v1579_v63 }
 0x29d   :  { %1583 = vadd.xlane.f32.xlu1 %v1582_v25 }
 0x31a   :  { %v1563_v24 = vpop.xlane.xlu0 %1562 }
 0x31b   :  { %v1607_v39 = vrot.slane %v1563_v24, %v1606_v32 }
 0x31e   :  { %v1566_v28 = vpop.xlane.xlu0 %1565  ;;  %v1569_v29 = vpop.xlane.xlu1 %1568 }
 0x31f   :  { %v1612_v35 = vrot.slane %v1566_v28, %v1611_v31  ;;  %v1618_v36 = vrot.slane %v1569_v29, %v1606_v32 }
 0x321   :  { %v1614_v42 = vsel %vm1613_vm5, %v1612_v35, %v1607_v39 }
 0x322   :  { %v1575_v30 = vpop.xlane.xlu0 %1574  ;;  %v1572_v59 = vpop.xlane.xlu1 %1571 }
 0x323   :  { %v1622_v33 = vrot.slane %v1572_v59, %v1611_v31  ;;  %v1627_v37 = vrot.slane %v1575_v30, %v1606_v32 }
 0x325   :  { %v1623_v1 = vsel %vm1613_vm5, %v1622_v33, %v1618_v36 }
 0x326   :  { %v1578_v34 = vpop.xlane.xlu1 %1577  ;;  %v1643_v44 = vsel %vm1642_vm6, %v1623_v1, %v1614_v42 }
 0x327   :  { %v1631_v50 = vrot.slane %v1578_v34, %v1611_v31  ;;  %v1581_v38 = vpop.xlane.xlu0 %1580 }
 0x328   :  { %v1636_v43 = vrot.slane %v1581_v38, %v1606_v32 }
 0x329   :  { %v1632_v40 = vsel %vm1613_vm5, %v1631_v50, %v1627_v37 }
 0x32a   :  { %v1584_v41 = vpop.xlane.xlu1 %1583  ;;  %v1645_v56 = vsel %vm1644_vm7, %v1632_v40, %v1643_v44 }
 0x32b   :  { %v1640_v11 = vrot.slane %v1584_v41, %v1611_v31 }
 0x32d   :  { %v1641_v55 = vsel %vm1613_vm5, %v1640_v11, %v1636_v43 }
 0x32e   :  { %v1647_v58 = vsel %vm1646_vm8, %v1641_v55, %v1645_v56 }
 0x32f   :  { %v1649_v60 = vsel %vm1648_vm9, %v1647_v58, 0 }
 0x330   :  { %v1718_v61 = vand.u32 4294901760, %v1649_v60 }
 0x332   :  { %v1719_v45 = vsub.f32 %v1649_v60, %v1718_v61 }
 0x334   :  { %v1720_v46 = vand.u32 4294901760, %v1719_v45 }
 0x336   :  { %v1721_v47 = vsub.f32 %v1719_v45, %v1720_v46 }
 0x338   :  { %v1722_v48 = vand.u32 4294901760, %v1721_v47 }
 0x33a   :  { %2418 = vmatmul.mubr.f32.vlgmr.msra.gmra.mrb[10].mxu0 %v1722_v48 }
 0x33b   :  { %2508 = vmatpush3.bf16.msra.mxu0 %v2507_v14  ;;  %2424 = vmatprep.mubr.msk.f32.mxu0 %vm2658_vm1, %v2657_v2 }
 0x33c   :  { %2509 = vmatprep.subr.bf16.mxu0 %v2660_v26 }
 0x342   :  { %2425 = vmatmul.mubr.f32.vlgmr.msra.gmra.mrb[10].mxu0 %v1718_v61 }
 0x343   :  { %2511 = vmatpush3.bf16.msra.mxu0 %v2510_v18  ;;  %2431 = vmatprep.mubr.msk.f32.mxu0 %vm2658_vm1, %v2657_v2 }
 0x344   :  { %2512 = vmatprep.subr.bf16.mxu0 %v2660_v26 }
 0x34a   :  { %2432 = vmatmul.mubr.f32.vlgmr.msra.gmra.mrb[10].mxu0 %v1719_v45 }
 0x34b   :  { %2514 = vmatpush3.bf16.msra.mxu0 %v2970_v6  ;;  %2438 = vmatprep.mubr.msk.f32.mxu0 %vm2658_vm1, %v2657_v2 }
 0x34c   :  { %2515 = vmatprep.subr.bf16.mxu0 %v2660_v26 }
 0x352   :  { %2439 = vmatmul.mubr.f32.vlgmr.msra.gmra.mrb[10].mxu0 %v1720_v46 }
 0x353   :  { %2517 = vmatpush3.bf16.msra.mxu0 %v2516_v23  ;;  %2445 = vmatprep.mubr.msk.f32.mxu0 %vm2658_vm1, %v2657_v2 }
 0x354   :  { %2518 = vmatprep.subr.bf16.mxu0 %v2660_v26 }
 0x35a   :  { %2446 = vmatmul.mubr.f32.vlgmr.msra.gmra.mrb[10].mxu0 %v1718_v61 }
 0x35b   :  { %2520 = vmatpush3.bf16.msra.mxu0 %v2970_v6  ;;  %2452 = vmatprep.mubr.msk.f32.mxu0 %vm2658_vm1, %v2657_v2 }
 0x362   :  { %2453 = vmatmul.mubr.f32.vlgmr.msra.gmra.mrb[10].mxu0 %v1718_v61 }
 0x435   :  { %v2106_v17 = vpop.f32.mrb[10].mxu0 }
 0x436   :  { %v2533_v49 = vadd.f32 %v2160_v16, %v2106_v17  ;;  %v2454_v51 = vpop.f32.mrb[11].mxu0 }
 0x438   :  { %v2117_v21 = vrot.slane %v2533_v49, %v2722_v15 }
 0x43a   :  { %v2118_v52 = vcombine.high %v2117_v21, %v2117_v21  ;;  %v2125_v53 = vrot.slane %v2117_v21, %v2722_v15 }
 0x43c   :  { %v2132_v22 = vrot.slane %v2118_v52, %v2722_v15  ;;  %v2133_v54 = vcombine.high %v2125_v53, %v2125_v53  ;;  %2140 = vst.msk [vmem:[#allocation2] sm:$0x1] %vm2139_vm10, %v2125_v53 }
 0x43e   :  { %v2134_v2 = vcombine.high %v2132_v22, %v2132_v22  ;;  %2141 = vst.msk [vmem:[#allocation2 + $0x1] sm:$0x1] %vm2139_vm10, %v2132_v22  ;;  %2142 = vst.msk [vmem:[#allocation2 + $0x2] sm:$0x1] %vm2139_vm10, %v2133_v54 }
 0x440   :  { %2143 = vst.msk [vmem:[#allocation2 + $0x3] sm:$0x1] %vm2139_vm10, %v2134_v2 }
 0x441   :  { %2644 = shalt.err (!%p2641_p4)
}
 0x442   :  { %s2645_s24 = scalar_lea.hbm %s3021_s6, 64 }
 0x443   :  { %p2646_p5 = scmp.ne.s32.totalorder %s3021_s6, %s2645_s24  ;;  %p2649_p6 = scmp.lt.u32.totalorder %s2645_s24, %s3021_s6 }
 0x445   :  { %p2651_p7 = pnand %p2649_p6, %p2646_p5 }
 0x447   :  { %2654 = shalt.err (!%p2651_p7)
}
 0x448   :  { %s2662_s28 = smov 16   ;;  %s2663_s29 = smov 1  }
 0x449   :  { %2155 = dma.vmem_to_hbm [thread:$0]  %s2150_s21, 64, %s3021_s6, [#allocation3], %s2662_s28, %s2662_s28, %s2663_s29  }
 0x44a   :  { %2655 = dma.done.wait [#allocation3], 64  }
 0x44b   :  { %2656 = vsyncadd [#allocation3], 4294967232 }
 0x44c   :  { %2159 = vsyncpa [#allocation3], 1 }

</bundles_post_ra>
